<compile_context>
chip_gen: v6e
topology: v6e:2x2x1
jax: 0.10.0
libtpu: 0.0.40
codegen_flags: <defaults>
</compile_context>

<pallas_src>
import math
from functools import partial

import jax
import jax.numpy as jnp
from jax import lax
from jax.experimental import pallas as pl
from jax.experimental.pallas import tpu as pltpu


# Large finite negative instead of -inf: keeps the online-softmax rescaling path free of
# inf-inf -> NaN hazards.
_MASK_VALUE = -0.7 * float(jnp.finfo(jnp.float32).max)


def _round_up(x, m):
    return ((x + m - 1) // m) * m


# ----------------------------------------------------------------------------------
# Kernel 1: fused QKV projection (one wide matmul), scale folded into Q.
# ----------------------------------------------------------------------------------
def _qkv_proj_kernel(x_ref, w_ref, q_ref, k_ref, v_ref, *, scale, d_out_p):
    # x_ref: (1, tp, d_in_p)     w_ref: (d_in_p, 3*d_out_p)
    # q/k/v_ref: (1, tp, d_out_p)  (dtype = MXU compute dtype, e.g. bf16)
    x = x_ref[0]                                                       # (tp, d_in_p)
    qkv = jnp.dot(x, w_ref[...], preferred_element_type=jnp.float32)  # (tp, 3*d_out_p)
    q_ref[0] = (qkv[:, :d_out_p] * scale).astype(q_ref.dtype)         # 1/sqrt(d_out) folded in
    k_ref[0] = qkv[:, d_out_p:2 * d_out_p].astype(k_ref.dtype)
    v_ref[0] = qkv[:, 2 * d_out_p:].astype(v_ref.dtype)


# ----------------------------------------------------------------------------------
# Kernel 2: flash attention with online softmax over KV tiles (tq == tkv).
# ----------------------------------------------------------------------------------
def _flash_attn_kernel(q_ref, k_ref, v_ref, o_ref, m_sc, l_sc, acc_sc):
    # q_ref: (1, tq, d)   k_ref/v_ref: (1, tkv, d)   o_ref: (1, tq, d)
    # scratch: m_sc (tq,1), l_sc (tq,1), acc_sc (tq,d) — persist across the kv axis.
    i = pl.program_id(1)          # q-tile index
    j = pl.program_id(2)          # kv-tile index (innermost, "arbitrary")
    tq = q_ref.shape[1]
    tkv = k_ref.shape[1]

    @pl.when(j == 0)
    def _init():
        m_sc[...] = jnp.full(m_sc.shape, _MASK_VALUE, m_sc.dtype)
        l_sc[...] = jnp.zeros(l_sc.shape, l_sc.dtype)
        acc_sc[...] = jnp.zeros(acc_sc.shape, acc_sc.dtype)

    def _accumulate(apply_mask):
        q = q_ref[0]              # (tq, d), already scaled by 1/sqrt(d_out)
        k = k_ref[0]              # (tkv, d)

        # QK^T: contract last dims directly — no explicit transpose of K.
        s = lax.dot_general(q, k, (((1,), (1,)), ((), ())),
                            preferred_element_type=jnp.float32)        # (tq, tkv)

        if apply_mask:
            # Diagonal tile only (i == j, tq == tkv): local row/col positions suffice.
            row = lax.broadcasted_iota(jnp.int32, (tq, tkv), 0)
            col = lax.broadcasted_iota(jnp.int32, (tq, tkv), 1)
            s = jnp.where(col > row, _MASK_VALUE, s)

        # Online softmax update (f32).
        m_prev = m_sc[...]
        m_new = jnp.maximum(m_prev, jnp.max(s, axis=-1, keepdims=True))
        alpha = jnp.exp(m_prev - m_new)
        p = jnp.exp(s - m_new)                                          # (tq, tkv)
        l_sc[...] = alpha * l_sc[...] + jnp.sum(p, axis=-1, keepdims=True)
        acc_sc[...] = alpha * acc_sc[...] + jnp.dot(
            p.astype(v_ref.dtype), v_ref[0], preferred_element_type=jnp.float32)
        m_sc[...] = m_new

    # Interior tiles: fully below the diagonal, no mask needed.
    @pl.when(j < i)
    def _interior():
        _accumulate(apply_mask=False)

    # Diagonal tile: mask + finalize (output complete as soon as the last real tile is
    # processed; steps with j > i do nothing and their K/V DMA is skipped via the
    # clamped index_map).
    @pl.when(j == i)
    def _diagonal():
        _accumulate(apply_mask=True)
        inv_l = pl.reciprocal(l_sc[...], approx=True)   # EUP slot, essentially free
        o_ref[0] = (acc_sc[...] * inv_l).astype(o_ref.dtype)

    # TODO(synk): training-mode dropout on attention weights not implemented
    # (nn.Dropout in eval mode is identity; would need pltpu.prng_seed/prng_random_bits).


# ----------------------------------------------------------------------------------
# Wrapper
# ----------------------------------------------------------------------------------
def causal_attention(x, wq_t, wk_t, wv_t, *, compute_dtype=jnp.bfloat16):
    """x: [B, T, d_in]; w*_t: [d_in, d_out] (transposed nn.Linear weights).

    compute_dtype: dtype of the Q/K/V intermediates fed to the MXU (bf16 by default;
    softmax statistics and accumulation are always f32).
    """
    B, T, d_in = x.shape
    d_out = wq_t.shape[1]
    dtype = x.dtype
    compute_dtype = jnp.dtype(compute_dtype)

    # Lane-dense padding: feature dims to multiples of 128; tokens to the tile size.
    d_in_p = _round_up(d_in, 128)
    d_out_p = _round_up(d_out, 128)

    # Attention tile (tq == tkv): 256-class tiles when T allows (MXU fill on v6e/v7x),
    # otherwise 128, otherwise the full (16-rounded) sequence.
    if T >= 256:
        blk = 256
    elif T >= 128:
        blk = 128
    else:
        blk = _round_up(T, 16)      # multiple of 16 keeps bf16 sublane packing happy
    t_pad = _round_up(T, blk)
    tq = tkv = blk
    n_q = t_pad // tq
    n_kv = t_pad // tkv

    # QKV-projection token tile: up to 512 rows per step (must divide t_pad).
    tp = blk
    for g in (4, 2):
        if n_q % g == 0 and blk * g <= 512:
            tp = blk * g
            break
    n_p = t_pad // tp

    scale = 1.0 / math.sqrt(d_out)   # reference divides by sqrt(original d_out)

    x_p = jnp.pad(x, ((0, 0), (0, t_pad - T), (0, d_in_p - d_in)))

    def _pad_w(w):
        return jnp.pad(w, ((0, d_in_p - d_in), (0, d_out_p - d_out)))

    # Fused QKV weight: (d_in_p, 3*d_out_p)
    w_qkv = jnp.concatenate([_pad_w(wq_t), _pad_w(wk_t), _pad_w(wv_t)], axis=1)

    # ---- Kernel 1: QKV projection -------------------------------------------------
    qkv_shape = jax.ShapeDtypeStruct((B, t_pad, d_out_p), compute_dtype)
    q, k, v = pl.pallas_call(
        partial(_qkv_proj_kernel, scale=scale, d_out_p=d_out_p),
        out_shape=(qkv_shape, qkv_shape, qkv_shape),
        grid_spec=pltpu.PrefetchScalarGridSpec(
            num_scalar_prefetch=0,
            grid=(B, n_p),
            in_specs=[
                pl.BlockSpec((1, tp, d_in_p), lambda b, i: (b, i, 0)),
                pl.BlockSpec((d_in_p, 3 * d_out_p), lambda b, i: (0, 0)),
            ],
            out_specs=[
                pl.BlockSpec((1, tp, d_out_p), lambda b, i: (b, i, 0)),
                pl.BlockSpec((1, tp, d_out_p), lambda b, i: (b, i, 0)),
                pl.BlockSpec((1, tp, d_out_p), lambda b, i: (b, i, 0)),
            ],
        ),
        compiler_params=pltpu.CompilerParams(
            dimension_semantics=("parallel", "parallel")),
    )(x_p, w_qkv)

    # ---- Kernel 2: flash attention -------------------------------------------------
    # K/V index_maps clamp the kv-block index to min(j, i): tiles above the causal
    # diagonal reuse the previous block index, so no DMA is issued for them.
    kv_index_map = lambda b, i, j: (b, jnp.minimum(j, i), 0)

    out_p = pl.pallas_call(
        _flash_attn_kernel,
        out_shape=jax.ShapeDtypeStruct((B, t_pad, d_out_p), dtype),
        grid_spec=pltpu.PrefetchScalarGridSpec(
            num_scalar_prefetch=0,
            grid=(B, n_q, n_kv),
            in_specs=[
                pl.BlockSpec((1, tq, d_out_p), lambda b, i, j: (b, i, 0)),
                pl.BlockSpec((1, tkv, d_out_p), kv_index_map),
                pl.BlockSpec((1, tkv, d_out_p), kv_index_map),
            ],
            out_specs=pl.BlockSpec((1, tq, d_out_p), lambda b, i, j: (b, i, 0)),
            scratch_shapes=[
                pltpu.VMEM((tq, 1), jnp.float32),        # running max m
                pltpu.VMEM((tq, 1), jnp.float32),        # running denom l
                pltpu.VMEM((tq, d_out_p), jnp.float32),  # running output acc
            ],
        ),
        compiler_params=pltpu.CompilerParams(
            dimension_semantics=("parallel", "parallel", "arbitrary")),
    )(q, k, v)

    return out_p[:, :T, :d_out]


# ----------------------------------------------------------------------------------
# Reference + self-test
# ----------------------------------------------------------------------------------
def _reference(x, wq_t, wk_t, wv_t):
    q = x @ wq_t
    k = x @ wk_t
    v = x @ wv_t
    s = jnp.einsum("btd,bsd->bts", q, k)
    T = x.shape[1]
    mask = jnp.triu(jnp.ones((T, T), bool), k=1)
    s = jnp.where(mask[None], -jnp.inf, s)
    a = jax.nn.softmax(s / math.sqrt(q.shape[-1]), axis=-1)
    return a @ v


if __name__ == "__main__":
    # Small deterministic problem. T=200 (not a tile multiple) exercises token padding,
    # multiple q/kv tiles, the clamped KV walk, diagonal-only masking and the online
    # softmax; d_in/d_out=32 exercise lane padding to 128.
    B, T, d_in, d_out = 2, 200, 32, 32
    context_length = T
    dropout = 0.0  # inference semantics

    key = jax.random.PRNGKey(0)
    kx, kq, kk, kv = jax.random.split(key, 4)

    x = jax.random.normal(kx, (B, T, d_in), dtype=jnp.float32)

    # nn.Linear weights are [d_out, d_in]; pass transposed [d_in, d_out] to the kernel.
    bound = 1.0 / math.sqrt(d_in)
    Wq = jax.random.uniform(kq, (d_out, d_in), jnp.float32, -bound, bound)
    Wk = jax.random.uniform(kk, (d_out, d_in), jnp.float32, -bound, bound)
    Wv = jax.random.uniform(kv, (d_out, d_in), jnp.float32, -bound, bound)

    ref = _reference(x, Wq.T, Wk.T, Wv.T)

    # f32 compute path: tight tolerance (approx reciprocal ~2^-12 rel + accumulation order).
    out_f32 = causal_attention(x, Wq.T, Wk.T, Wv.T, compute_dtype=jnp.float32)
    out_f32 = jax.block_until_ready(out_f32)
    assert out_f32.shape == (B, T, d_out)
    assert jnp.allclose(out_f32, ref, atol=2e-3, rtol=2e-3), "f32 path mismatch vs reference"

    # bf16 MXU path (default): looser tolerance for bf16 Q/K/V/P intermediates.
    out_bf16 = causal_attention(x, Wq.T, Wk.T, Wv.T)
    out_bf16 = jax.block_until_ready(out_bf16)
    assert out_bf16.shape == (B, T, d_out)
    assert jnp.allclose(out_bf16, ref, atol=2e-2, rtol=2e-2), "bf16 path mismatch vs reference"

    print("KERNEL_OK")
</pallas_src>

<mosaic_0001>
module attributes {stable_mosaic.version = 11 : i64} {
  func.func @_qkv_proj_kernel(%arg0: i32, %arg1: i32, %arg2: memref<1x256x128xf32, #tpu.memory_space<vmem>>, %arg3: memref<128x384xf32, #tpu.memory_space<vmem>>, %arg4: memref<1x256x128xf32, #tpu.memory_space<vmem>>, %arg5: memref<1x256x128xf32, #tpu.memory_space<vmem>>, %arg6: memref<1x256x128xf32, #tpu.memory_space<vmem>>) attributes {dimension_semantics = [#tpu.dimension_semantics<parallel>, #tpu.dimension_semantics<parallel>], iteration_bounds = array<i64: 2, 1>, scalar_prefetch = 0 : i64, scratch_operands = 0 : i64, tpu.core_type = #tpu.core_type<tc>, window_params = [{transform_indices = @transform_0, window_bounds = array<i64: 1, 256, 128>}, {pipeline_mode = #tpu.pipeline_mode<synchronous>, transform_indices = @transform_1, window_bounds = array<i64: 128, 384>}, {transform_indices = @transform_2, window_bounds = array<i64: 1, 256, 128>}, {transform_indices = @transform_3, window_bounds = array<i64: 1, 256, 128>}, {transform_indices = @transform_4, window_bounds = array<i64: 1, 256, 128>}]} {
    %c0 = arith.constant 0 : index
    %c0_0 = arith.constant 0 : index
    %c0_1 = arith.constant 0 : index
    %0 = vector.load %arg2[%c0, %c0_0, %c0_1] : memref<1x256x128xf32, #tpu.memory_space<vmem>>, vector<1x256x128xf32>
    %1 = vector.shape_cast %0 : vector<1x256x128xf32> to vector<256x128xf32>
    %c0_2 = arith.constant 0 : index
    %c0_3 = arith.constant 0 : index
    %2 = vector.load %arg3[%c0_2, %c0_3] : memref<128x384xf32, #tpu.memory_space<vmem>>, vector<128x384xf32>
    %cst = arith.constant dense<0.000000e+00> : vector<256x384xf32>
    %3 = tpu.matmul %1, %2, %cst {dimension_numbers = #tpu.dot_dimension_numbers<[1], [0], [0], [1], [0, 0, 1, 1], [], []>} : vector<256x128xf32>, vector<128x384xf32>, vector<256x384xf32> -> vector<256x384xf32>
    %4 = vector.extract_strided_slice %3 {offsets = [0, 0], sizes = [256, 128], strides = [1, 1]} : vector<256x384xf32> to vector<256x128xf32>
    %cst_4 = arith.constant 0.176776692 : f32
    %5 = vector.broadcast %cst_4 : f32 to vector<256x128xf32>
    %6 = arith.mulf %4, %5 : vector<256x128xf32>
    %c0_5 = arith.constant 0 : index
    %c0_6 = arith.constant 0 : index
    %c0_7 = arith.constant 0 : index
    %7 = vector.load %arg4[%c0_5, %c0_6, %c0_7] : memref<1x256x128xf32, #tpu.memory_space<vmem>>, vector<1x256x128xf32>
    %8 = vector.shape_cast %7 : vector<1x256x128xf32> to vector<256x128xf32>
    %9 = vector.shape_cast %6 : vector<256x128xf32> to vector<1x256x128xf32>
    tpu.vector_store %arg4[%c0_5, %c0_6, %c0_7], %9 {strides = array<i32>} : memref<1x256x128xf32, #tpu.memory_space<vmem>>, vector<1x256x128xf32>,
    %10 = vector.extract_strided_slice %3 {offsets = [0, 128], sizes = [256, 128], strides = [1, 1]} : vector<256x384xf32> to vector<256x128xf32>
    %c0_8 = arith.constant 0 : index
    %c0_9 = arith.constant 0 : index
    %c0_10 = arith.constant 0 : index
    %11 = vector.load %arg5[%c0_8, %c0_9, %c0_10] : memref<1x256x128xf32, #tpu.memory_space<vmem>>, vector<1x256x128xf32>
    %12 = vector.shape_cast %11 : vector<1x256x128xf32> to vector<256x128xf32>
    %13 = vector.shape_cast %10 : vector<256x128xf32> to vector<1x256x128xf32>
    tpu.vector_store %arg5[%c0_8, %c0_9, %c0_10], %13 {strides = array<i32>} : memref<1x256x128xf32, #tpu.memory_space<vmem>>, vector<1x256x128xf32>,
    %14 = vector.extract_strided_slice %3 {offsets = [0, 256], sizes = [256, 128], strides = [1, 1]} : vector<256x384xf32> to vector<256x128xf32>
    %c0_11 = arith.constant 0 : index
    %c0_12 = arith.constant 0 : index
    %c0_13 = arith.constant 0 : index
    %15 = vector.load %arg6[%c0_11, %c0_12, %c0_13] : memref<1x256x128xf32, #tpu.memory_space<vmem>>, vector<1x256x128xf32>
    %16 = vector.shape_cast %15 : vector<1x256x128xf32> to vector<256x128xf32>
    %17 = vector.shape_cast %14 : vector<256x128xf32> to vector<1x256x128xf32>
    tpu.vector_store %arg6[%c0_11, %c0_12, %c0_13], %17 {strides = array<i32>} : memref<1x256x128xf32, #tpu.memory_space<vmem>>, vector<1x256x128xf32>,
    return
  }
  func.func @transform_0(%arg0: i32, %arg1: i32) -> (i32, i32, i32) {
    %c0_i32 = arith.constant 0 : i32
    %c0_i32_0 = arith.constant 0 : i32
    return %arg0, %arg1, %c0_i32 : i32, i32, i32
  }
  func.func @transform_1(%arg0: i32, %arg1: i32) -> (i32, i32) {
    %c0_i32 = arith.constant 0 : i32
    %c0_i32_0 = arith.constant 0 : i32
    %c0_i32_1 = arith.constant 0 : i32
    return %c0_i32, %c0_i32_0 : i32, i32
  }
  func.func @transform_2(%arg0: i32, %arg1: i32) -> (i32, i32, i32) {
    %c0_i32 = arith.constant 0 : i32
    %c0_i32_0 = arith.constant 0 : i32
    return %arg0, %arg1, %c0_i32 : i32, i32, i32
  }
  func.func @transform_3(%arg0: i32, %arg1: i32) -> (i32, i32, i32) {
    %c0_i32 = arith.constant 0 : i32
    %c0_i32_0 = arith.constant 0 : i32
    return %arg0, %arg1, %c0_i32 : i32, i32, i32
  }
  func.func @transform_4(%arg0: i32, %arg1: i32) -> (i32, i32, i32) {
    %c0_i32 = arith.constant 0 : i32
    %c0_i32_0 = arith.constant 0 : i32
    return %arg0, %arg1, %c0_i32 : i32, i32, i32
  }
}

</mosaic_0001>

<bundles_post_ra>
// kernel: tpu_custom_call.1
= control target key start
LH: loop header
LB: loop body
LE: loop exit
PB: predicated region body
PF: predicated region fallthrough
CT: control target
= control target key end

     0   :  { %s2177_s0 = inlined_call_operand.hbm [shape: f32[2,256,128], index: 0, kind: input, shape index: {}]   ;;  %s2178_s1 = inlined_call_operand.hbm [shape: f32[128,384], index: 1, kind: input, shape index: {}]   ;;  %s2179_s2 = inlined_call_operand.hbm [shape: f32[2,256,128], index: 2, kind: output, shape index: {0}]   ;;  %s2180_s3 = inlined_call_operand.hbm [shape: f32[2,256,128], index: 3, kind: output, shape index: {1}]   ;;  %s2181_s4 = inlined_call_operand.hbm [shape: f32[2,256,128], index: 4, kind: output, shape index: {2}]  }
   0x1   :  { %2184 = sst [smem:[#allocation15_spill]] %s2178_s1 }
   0x2   :  { %10 = vsyncpa [#allocation3], 0 }
   0x3   :  { %12 = vsyncpa [#allocation3 + $0x1], 0 }
   0x4   :  { %13 = vsyncpa [#allocation6], 0 }
   0x5   :  { %14 = vsyncpa [#allocation4], 0 }
   0x6   :  { %16 = vsyncpa [#allocation4 + $0x1], 0 }
   0x7   :  { %17 = vsyncpa [#allocation9], 0 }
   0x8   :  { %19 = vsyncpa [#allocation9 + $0x1], 0  ;;  %s1703_s15 = smov 0   ;;  %s1705_s16 = smov 0  }
   0x9   :  { %s1707_s17 = smov 0   ;;  %s1709_s18 = smov 0  }
   0xa   :  { %s1711_s19 = smov 0   ;;  %s1713_s20 = smov 0  }
   0xb LB: > { %s1734_s21 = sadd.s32 4294967295, %s1664_s20   ;;  %s2182_s22 = sadd.s32 4294967294, %s1664_s20   ;;  %s1664_s20 = sphi %s1713_s20, %s25_s20   ;;  %s1660_s19 = sphi %s1711_s19, %s2203_s19   ;;  %s1656_s18 = sphi %s1709_s18, %s2202_s18   ;;  %s1652_s17 = sphi %s1707_s17, %s2201_s17   ;;  %s1648_s16 = sphi %s1705_s16, %s2200_s16   ;;  %s1644_s15 = sphi %s1703_s15, %s2199_s15  }
   0xc   : > { %p59_p0 = scmp.ne.s32.totalorder %s1648_s16, %s1644_s15  ;;  %p2183_p1 = scmp.eq.s32.totalorder %s1734_s21, 0 }
   0xd   : > { %p112_p3 = scmp.eq.s32.totalorder %s2182_s22, 1  ;;  %p1193_p5 = scmp.ge.s32.totalorder %s1664_s20, 1 }
   0xe   : > { %p1745_p4 = por %p2183_p1, %p59_p0  ;;  %p175_p7 = scmp.lt.s32.totalorder %s1664_s20, 3 }
   0xf   : > { %p1750_p6 = por %p112_p3, %p59_p0  ;;  %s1666_s26 = smov [#allocation5]  }
  0x10   : > { %p1755_p8 = pnand %p1193_p5, %p175_p7  ;;  %s187_s27 = sshll.u32 %s1666_s26, 4  ;;  %s188_s27 = int_to_ptr.vmem [resolvable:$true] %s187_s27 }
  0x11   : > { %s2186_s24 = scalar_select %p1750_p6, 1, 0 }
  0x12   : > { %p1392_p9 = pneg %p1755_p8  ;;  %s37_s29 = sadd.s32 1, %s1660_s19 }
  0x13   : > { %s1481_s30 = scalar_lea.vmem %s188_s27, 6144  ;;  %p1489_p5 = scmp.lt.s32.totalorder %s188_s27, %s188_s27 }
  0x14   : > { %p1764_p11 = pnand %p1392_p9, %p2183_p1  ;;  %p1482_p13 = scmp.ne.s32.totalorder %s188_s27, %s1481_s30 }
  0x15   : > { %p1490_p7 = scmp.lt.s32.totalorder %s1481_s30, %s1481_s30 }
  0x16   : > { %p1472_p12 = pneg %p1764_p11 }
  0x17   : > { %p1491_p2 = por %p1490_p7, %p1489_p5 }
  0x18   : > { %p1484_p0 = pnand %p1482_p13, %p1472_p12 }
  0x1a   : > { %p1485_p3 = pneg %p1484_p0 }
  0x1c   : > { %p1492_p6 = pnand %p1491_p2, %p1485_p3 }
  0x1e   : > { %1495 = shalt.err (!%p1492_p6)
}
  0x1f   : > { %s1667_s5 = smov 384   ;;  %s1668_s6 = smov 24  }
  0x20   : > { %s2189_s1 = sld [smem:[#allocation15_spill]]  ;;  %p39_p2 = scmp.ge.s32.totalorder %s37_s29, 2 }
  0x21   : > { %s46_s9 = sadd.s32 1, %s1652_s17  ;;  %p53_p6 = scmp.ne.s32.totalorder %s1652_s17, %s1648_s16 }
  0x22   : > { %p54_p9 = scmp.eq.s32.totalorder %s1664_s20, 0  ;;  %s2205_s29 = smov (%p39_p2, %s37_s29), 0 }
  0x23   : > { %p2191_p13 = scmp.eq.s32.totalorder %s1734_s21, 1  ;;  %s41_s12 = ssub.s32 %s1660_s19, %s2205_s29 }
  0x24   : > { %p1782_p12 = por %p54_p9, %p53_p6  ;;  %p1411_p3 = scmp.lt.s32.totalorder %s1664_s20, 2 }
  0x25   : > { %p1788_p0 = por %p2191_p13, %p53_p6  ;;  %s201_s13 = sand.u32 1, %s1652_s17  }
  0x26   : > { %1395 = dma.hbm_to_vmem [thread:$0]  (!%p1764_p11), %s2189_s1, 6144, %s188_s27, [#allocation6], %s1667_s5, %s1667_s5, %s1668_s6  }
  0x27   : > { %p44_p11 = scmp.eq.s32.totalorder %s41_s12, 0  ;;  %s1196_s14 = sshll.u32 %s201_s13, 8 }
  0x28   : > { %s1216_s27 = sshll.u32 %s1660_s19, 12  ;;  %s205_s6 = scalar_lea.vmem [#allocation2], %s1196_s14 }
  0x29   : > { %s1797_s26 = scalar_select %p44_p11, %s1652_s17, %s46_s9  }
  0x2a   : > { %s213_s5 = scalar_lea.hbm %s2177_s0, %s1216_s27  ;;  %s214_s7 = sshll.u32 %s205_s6, 4  ;;  %s215_s7 = int_to_ptr.vmem [resolvable:$true] %s214_s7 }
  0x2b   : > { %p1805_p5 = pnand %p1411_p3, %p1782_p12  ;;  %s202_s22 = scalar_lea.sflag [#allocation3], %s201_s13 }
  0x2c   : > { %s1509_s12 = scalar_lea.vmem %s215_s7, 4096  ;;  %s1669_s9 = smov [#allocation2]  }
  0x2d   : > { %p1498_p7 = pneg %p1805_p5  ;;  %p1510_p2 = scmp.ne.s32.totalorder %s215_s7, %s1509_s12 }
  0x2e   : > { %s1514_s1 = sshll.u32 %s1669_s9, 4  ;;  %s1515_s1 = int_to_ptr.vmem [resolvable:$false] %s1514_s1 }
  0x2f   : > { %p1512_p6 = pnand %p1510_p2, %p1498_p7  ;;  %s1516_s27 = scalar_lea.vmem %s1515_s1, 8192 }
  0x30   : > { %p1517_p13 = scmp.lt.s32.totalorder %s215_s7, %s1515_s1  ;;  %p1518_p11 = scmp.lt.s32.totalorder %s1516_s27, %s1509_s12 }
  0x31   : > { %p1513_p9 = pneg %p1512_p6 }
  0x32   : > { %p1519_p10 = por %p1518_p11, %p1517_p13 }
  0x34   : > { %p1520_p1 = pnand %p1519_p10, %p1513_p9 }
  0x36   : > { %1523 = shalt.err (!%p1520_p1)
}
  0x37   : > { %s1670_s10 = smov 128   ;;  %s1671_s14 = smov 8  }
  0x38   : > { %1399 = dma.hbm_to_vmem [thread:$0]  (!%p1805_p5), %s213_s5, 4096, %s215_s7, %s202_s22, %s1670_s10, %s1670_s10, %s1671_s14  }
  0x39   : > { %226 = sbr.rel (%p1755_p8) target bundleno = 451 (0x1c3), region = 28  ;;  %s1816_s13 = sand.u32 (!%p1755_p8), 1, %s1648_s16  }
  0x3a   : > { %s1819_s28 = sshll.u32 (!%p1755_p8), %s1816_s13, 8  ;;  %s229_s1 = scalar_lea.sflag (!%p1755_p8), [#allocation3], %s1816_s13 }
  0x3b   : > { %s1823_s30 = scalar_lea.vmem (!%p1755_p8), [#allocation2], %s1819_s28 }
  0x3e   : > { %1627 = dma.done.wait (%p1745_p4), %s229_s1, 4096  }
  0x3f   : > { %1629 = vsyncadd (%p1745_p4), %s229_s1, 4294963200  ;;  %p2194_p1 = scmp.eq.s32.totalorder %s1734_s21, 0 }
  0x41   : > { %1631 = dma.done.wait (%p2194_p1), [#allocation6], 6144   ;;  %p2195_p8 = pmov %p2194_p1 }
  0x42   : > { %v1672_v0 = vmov 0.0   ;;  %v353_v1 = vld [vmem:[#allocation5 + $0x170] sm:$0xff]  ;;  %v352_v2 = vld [vmem:[#allocation5 + $0x168] sm:$0xff]  ;;  %v350_v3 = vld [vmem:[#allocation5 + $0x158] sm:$0xff]  ;;  %s1946_s22 = scalar_lea.vmem [#allocation7], %s1819_s28  ;;  %s1951_s23 = scalar_lea.vmem [#allocation8], %s1819_s28 }
  0x43   : > { %1633 = vsyncadd (%p2195_p8), [#allocation6], 4294961152  ;;  %419 = vmatprep.mubr.f32.mxu0 %v1672_v0  ;;  %563 = vmatprep.mubr.f32.mxu1 %v1672_v0  ;;  %v349_v4 = vld [vmem:[#allocation5 + $0x150] sm:$0xff]  ;;  %v347_v5 = vld [vmem:[#allocation5 + $0x140] sm:$0xff]  ;;  %s1984_s25 = scalar_lea.vmem [#allocation10], %s1819_s28  ;;  %s970_s5 = sand.u32 1, %s1734_s21  }
  0x44   : > { %355 = vmatprep.subr.mxu0 %v353_v1  ;;  %1348 = vmatprep.subr.mxu1 %v353_v1  ;;  %v346_v6 = vld [vmem:[#allocation5 + $0x138] sm:$0xff]  ;;  %v344_v7 = vld [vmem:[#allocation5 + $0x128] sm:$0xff]  ;;  %v343_v8 = vld [vmem:[#allocation5 + $0x120] sm:$0xff]  ;;  %s1217_s6 = sshll.u32 %s1656_s18, 12  ;;  %s1009_s7 = sshll.u32 %s1951_s23, 4  ;;  %s2056_s7 = int_to_ptr.vmem [resolvable:$true] %s1009_s7 }
  0x45   : > { %356 = vmatpush1.msra.mxu0 %v352_v2  ;;  %1364 = vmatpush1.msra.mxu1 %v352_v2  ;;  %v341_v9 = vld [vmem:[#allocation5 + $0x110] sm:$0xff]  ;;  %v340_v10 = vld [vmem:[#allocation5 + $0x108] sm:$0xff]  ;;  %v338_v11 = vld [vmem:[#allocation5 + $0xf8] sm:$0xff]  ;;  %s991_s8 = sshll.u32 %s1946_s22, 4  ;;  %s2053_s27 = scalar_lea.hbm %s2180_s3, %s1217_s6  ;;  %s2064_s8 = int_to_ptr.vmem [resolvable:$true] %s991_s8 }
  0x46   : > { %357 = vmatprep.subr.mxu0 %v350_v3  ;;  %1349 = vmatprep.subr.mxu1 %v350_v3  ;;  %v337_v12 = vld [vmem:[#allocation5 + $0xf0] sm:$0xff]  ;;  %v335_v13 = vld [vmem:[#allocation5 + $0xe0] sm:$0xff]  ;;  %v334_v14 = vld [vmem:[#allocation5 + $0xd8] sm:$0xff]  ;;  %s1027_s10 = sshll.u32 %s1984_s25, 4  ;;  %s2062_s28 = scalar_lea.hbm %s2179_s2, %s1217_s6  ;;  %s2073_s10 = int_to_ptr.vmem [resolvable:$true] %s1027_s10 }
  0x47   : > { %358 = vmatpush1.msra.mxu0 %v349_v4  ;;  %1365 = vmatpush1.msra.mxu1 %v349_v4  ;;  %v332_v15 = vld [vmem:[#allocation5 + $0xc8] sm:$0xff]  ;;  %v331_v16 = vld [vmem:[#allocation5 + $0xc0] sm:$0xff]  ;;  %v329_v17 = vld [vmem:[#allocation5 + $0xb0] sm:$0xff]  ;;  %s2071_s12 = scalar_lea.hbm %s2181_s4, %s1217_s6  ;;  %s2078_s9 = scalar_lea.sflag [#allocation9], %s970_s5 }
  0x48   : > { %359 = vmatprep.subr.mxu0 %v347_v5  ;;  %1350 = vmatprep.subr.mxu1 %v347_v5  ;;  %v328_v18 = vld [vmem:[#allocation5 + $0xa8] sm:$0xff]  ;;  %v326_v19 = vld [vmem:[#allocation5 + $0x98] sm:$0xff]  ;;  %v325_v20 = vld [vmem:[#allocation5 + $0x90] sm:$0xff]  ;;  %s1524_s18 = scalar_lea.vmem %s2056_s7, 4096  ;;  %s1673_s14 = smov [#allocation8]  }
  0x49   : > { %360 = vmatpush1.msra.mxu0 %v346_v6  ;;  %1366 = vmatpush1.msra.mxu1 %v346_v6  ;;  %v323_v21 = vld [vmem:[#allocation5 + $0x80] sm:$0xff]  ;;  %v322_v22 = vld [vmem:[#allocation5 + $0x78] sm:$0xff]  ;;  %v320_v23 = vld [vmem:[#allocation5 + $0x68] sm:$0xff]  ;;  %p1525_p4 = scmp.ne.s32.totalorder %s2056_s7, %s1524_s18 }
  0x4a   : > { %361 = vmatprep.subr.mxu0 %v344_v7  ;;  %1351 = vmatprep.subr.mxu1 %v344_v7  ;;  %v319_v24 = vld [vmem:[#allocation5 + $0x60] sm:$0xff]  ;;  %v317_v25 = vld [vmem:[#allocation5 + $0x50] sm:$0xff]  ;;  %v316_v26 = vld [vmem:[#allocation5 + $0x48] sm:$0xff] }
  0x4b   : > { %362 = vmatpush1.msra.mxu0 %v343_v8  ;;  %1367 = vmatpush1.msra.mxu1 %v343_v8  ;;  %v314_v27 = vld [vmem:[#allocation5 + $0x38] sm:$0xff]  ;;  %v313_v28 = vld [vmem:[#allocation5 + $0x30] sm:$0xff]  ;;  %v311_v29 = vld [vmem:[#allocation5 + $0x20] sm:$0xff]  ;;  %p1526_p10 = pnand %p1525_p4, %p1788_p0 }
  0x4c   : > { %363 = vmatprep.subr.mxu0 %v341_v9  ;;  %1352 = vmatprep.subr.mxu1 %v341_v9  ;;  %v310_v30 = vld [vmem:[#allocation5 + $0x18] sm:$0xff]  ;;  %v308_v31 = vld [vmem:[#allocation5 + $0x8] sm:$0xff]  ;;  %v307_v32 = vld [vmem:[#allocation5] sm:$0xff] }
  0x4d   : > { %364 = vmatpush1.msra.mxu0 %v340_v10  ;;  %1368 = vmatpush1.msra.mxu1 %v340_v10  ;;  %v1836_v33 = vld [vmem:[%s1823_s30] sm:$0xff]  ;;  %v354_v35 = vld [vmem:[#allocation5 + $0x178] sm:$0xff]  ;;  %v1845_v37 = vld [vmem:[%s1823_s30 + $0x8] sm:$0xff]  ;;  %p1527_p12 = pneg %p1526_p10 }
  0x4e   : > { %365 = vmatprep.subr.mxu0 %v338_v11  ;;  %1353 = vmatprep.subr.mxu1 %v338_v11  ;;  %v1839_v34 = vld [vmem:[%s1823_s30 + $0xc0] sm:$0xff]  ;;  %v1849_v38 = vld [vmem:[%s1823_s30 + $0xc8] sm:$0xff]  ;;  %v345_v40 = vld [vmem:[#allocation5 + $0x130] sm:$0xff] }
  0x4f   : > { %366 = vmatpush1.msra.mxu0 %v337_v12  ;;  %1369 = vmatpush1.msra.mxu1 %v337_v12  ;;  %v351_v36 = vld [vmem:[#allocation5 + $0x160] sm:$0xff]  ;;  %v348_v39 = vld [vmem:[#allocation5 + $0x148] sm:$0xff]  ;;  %v1854_v41 = vld [vmem:[%s1823_s30 + $0x10] sm:$0xff] }
  0x50   : > { %367 = vmatprep.subr.mxu0 %v335_v13  ;;  %1354 = vmatprep.subr.mxu1 %v335_v13  ;;  %v1858_v42 = vld [vmem:[%s1823_s30 + $0xd0] sm:$0xff]  ;;  %v342_v43 = vld [vmem:[#allocation5 + $0x118] sm:$0xff]  ;;  %v339_v44 = vld [vmem:[#allocation5 + $0x100] sm:$0xff] }
  0x51   : > { %368 = vmatpush1.msra.mxu0 %v334_v14  ;;  %1370 = vmatpush1.msra.mxu1 %v334_v14  ;;  %v1864_v45 = vld [vmem:[%s1823_s30 + $0x18] sm:$0xff]  ;;  %v336_v47 = vld [vmem:[#allocation5 + $0xe8] sm:$0xff]  ;;  %v333_v48 = vld [vmem:[#allocation5 + $0xd0] sm:$0xff] }
  0x52   : > { %369 = vmatprep.subr.mxu0 %v332_v15  ;;  %1355 = vmatprep.subr.mxu1 %v332_v15  ;;  %v1868_v46 = vld [vmem:[%s1823_s30 + $0xd8] sm:$0xff]  ;;  %v279_v49 = vld [vmem:[%s1823_s30 + $0x20] sm:$0xff]  ;;  %v280_v53 = vld [vmem:[%s1823_s30 + $0x28] sm:$0xff] }
  0x53   : > { %370 = vmatpush1.msra.mxu0 %v331_v16  ;;  %1371 = vmatpush1.msra.mxu1 %v331_v16  ;;  %v1876_v50 = vld [vmem:[%s1823_s30 + $0xe0] sm:$0xff]  ;;  %v330_v51 = vld [vmem:[#allocation5 + $0xb8] sm:$0xff]  ;;  %v1883_v54 = vld [vmem:[%s1823_s30 + $0xe8] sm:$0xff] }
  0x54   : > { %371 = vmatprep.subr.mxu0 %v329_v17  ;;  %1356 = vmatprep.subr.mxu1 %v329_v17  ;;  %v327_v52 = vld [vmem:[#allocation5 + $0xa0] sm:$0xff]  ;;  %v324_v55 = vld [vmem:[#allocation5 + $0x88] sm:$0xff]  ;;  %v321_v56 = vld [vmem:[#allocation5 + $0x70] sm:$0xff] }
  0x55   : > { %372 = vmatpush1.msra.mxu0 %v328_v18  ;;  %1372 = vmatpush1.msra.mxu1 %v328_v18  ;;  %v281_v57 = vld [vmem:[%s1823_s30 + $0x30] sm:$0xff]  ;;  %v318_v59 = vld [vmem:[#allocation5 + $0x58] sm:$0xff]  ;;  %v315_v60 = vld [vmem:[#allocation5 + $0x40] sm:$0xff] }
  0x56   : > { %373 = vmatprep.subr.mxu0 %v326_v19  ;;  %1357 = vmatprep.subr.mxu1 %v326_v19  ;;  %v1890_v58 = vld [vmem:[%s1823_s30 + $0xf0] sm:$0xff]  ;;  %v282_v61 = vld [vmem:[%s1823_s30 + $0x38] sm:$0xff]  ;;  %v312_v63 = vld [vmem:[#allocation5 + $0x28] sm:$0xff] }
  0x57   : > { %374 = vmatpush1.msra.mxu0 %v325_v20  ;;  %1373 = vmatpush1.msra.mxu1 %v325_v20  ;;  %v1897_v62 = vld [vmem:[%s1823_s30 + $0xf8] sm:$0xff]  ;;  %v309_v1 = vld [vmem:[#allocation5 + $0x10] sm:$0xff]  ;;  %v283_v2 = vld [vmem:[%s1823_s30 + $0x40] sm:$0xff] }
  0x58   : > { %375 = vmatprep.subr.mxu0 %v323_v21  ;;  %1358 = vmatprep.subr.mxu1 %v323_v21  ;;  %v284_v3 = vld [vmem:[%s1823_s30 + $0x48] sm:$0xff]  ;;  %v285_v4 = vld [vmem:[%s1823_s30 + $0x50] sm:$0xff]  ;;  %v286_v5 = vld [vmem:[%s1823_s30 + $0x58] sm:$0xff] }
  0x59   : > { %376 = vmatpush1.msra.mxu0 %v322_v22  ;;  %1374 = vmatpush1.msra.mxu1 %v322_v22  ;;  %v287_v6 = vld [vmem:[%s1823_s30 + $0x60] sm:$0xff]  ;;  %v288_v7 = vld [vmem:[%s1823_s30 + $0x68] sm:$0xff]  ;;  %v289_v8 = vld [vmem:[%s1823_s30 + $0x70] sm:$0xff] }
  0x5a   : > { %377 = vmatprep.subr.mxu0 %v320_v23  ;;  %1359 = vmatprep.subr.mxu1 %v320_v23  ;;  %v290_v9 = vld [vmem:[%s1823_s30 + $0x78] sm:$0xff]  ;;  %v291_v10 = vld [vmem:[%s1823_s30 + $0x80] sm:$0xff]  ;;  %v292_v11 = vld [vmem:[%s1823_s30 + $0x88] sm:$0xff] }
  0x5b   : > { %378 = vmatpush1.msra.mxu0 %v319_v24  ;;  %1375 = vmatpush1.msra.mxu1 %v319_v24  ;;  %v293_v12 = vld [vmem:[%s1823_s30 + $0x90] sm:$0xff]  ;;  %v294_v13 = vld [vmem:[%s1823_s30 + $0x98] sm:$0xff]  ;;  %v295_v14 = vld [vmem:[%s1823_s30 + $0xa0] sm:$0xff] }
  0x5c   : > { %379 = vmatprep.subr.mxu0 %v317_v25  ;;  %1360 = vmatprep.subr.mxu1 %v317_v25  ;;  %v296_v15 = vld [vmem:[%s1823_s30 + $0xa8] sm:$0xff]  ;;  %v297_v16 = vld [vmem:[%s1823_s30 + $0xb0] sm:$0xff]  ;;  %v298_v17 = vld [vmem:[%s1823_s30 + $0xb8] sm:$0xff] }
  0x5d   : > { %380 = vmatpush1.msra.mxu0 %v316_v26  ;;  %1376 = vmatpush1.msra.mxu1 %v316_v26 }
  0x5e   : > { %381 = vmatprep.subr.mxu0 %v314_v27  ;;  %1361 = vmatprep.subr.mxu1 %v314_v27 }
  0x5f   : > { %382 = vmatpush1.msra.mxu0 %v313_v28  ;;  %1377 = vmatpush1.msra.mxu1 %v313_v28 }
  0x60   : > { %383 = vmatprep.subr.mxu0 %v311_v29  ;;  %1362 = vmatprep.subr.mxu1 %v311_v29 }
  0x61   : > { %384 = vmatpush1.msra.mxu0 %v310_v30  ;;  %1378 = vmatpush1.msra.mxu1 %v310_v30 }
  0x62   : > { %385 = vmatprep.subr.mxu0 %v308_v31  ;;  %1363 = vmatprep.subr.mxu1 %v308_v31 }
  0x63   : > { %386 = vmatpush1.msra.mxu0 %v307_v32  ;;  %1379 = vmatpush1.msra.mxu1 %v307_v32 }
  0x64   : > { %420 = vmatmul.mubr.f32.vlgmr.msra.gmra.mxu0 %v1836_v33  ;;  %564 = vmatmul.mubr.f32.vlgmr.msra.gmra.mxu1 %v1839_v34 }
  0x65   : > { %1268 = vmatprep.subr.mxu1 %v354_v35  ;;  %425 = vmatprep.mubr.f32.mxu0 %v1672_v0 }
  0x66   : > { %1269 = vmatpush3.msra.mxu1 %v354_v35  ;;  %569 = vmatprep.mubr.f32.mxu1 %v1672_v0 }
  0x67   : > { %1270 = vmatprep.subr.mxu1 %v351_v36 }
  0x68   : > { %1271 = vmatpush3.msra.mxu1 %v351_v36  ;;  %426 = vmatmul.mubr.f32.gmra.mxu0 %v1845_v37 }
  0x69   : > { %570 = vmatmul.mubr.f32.gmra.mxu1 %v1849_v38  ;;  %1272 = vmatprep.subr.mxu1 %v348_v39 }
  0x6a   : > { %1273 = vmatpush3.msra.mxu1 %v348_v39  ;;  %431 = vmatprep.mubr.f32.mxu0 %v1672_v0 }
  0x6b   : > { %1274 = vmatprep.subr.mxu1 %v345_v40  ;;  %575 = vmatprep.mubr.f32.mxu1 %v1672_v0 }
  0x6c   : > { %1275 = vmatpush3.msra.mxu1 %v345_v40  ;;  %432 = vmatmul.mubr.f32.gmra.mxu0 %v1854_v41 }
  0x6d   : > { %576 = vmatmul.mubr.f32.gmra.mxu1 %v1858_v42  ;;  %1276 = vmatprep.subr.mxu1 %v342_v43 }
  0x6e   : > { %1277 = vmatpush3.msra.mxu1 %v342_v43  ;;  %437 = vmatprep.mubr.f32.mxu0 %v1672_v0 }
  0x6f   : > { %1278 = vmatprep.subr.mxu1 %v339_v44  ;;  %581 = vmatprep.mubr.f32.mxu1 %v1672_v0 }
  0x70   : > { %1279 = vmatpush3.msra.mxu1 %v339_v44  ;;  %438 = vmatmul.mubr.f32.gmra.mxu0 %v1864_v45 }
  0x71   : > { %582 = vmatmul.mubr.f32.gmra.mxu1 %v1868_v46  ;;  %1280 = vmatprep.subr.mxu1 %v336_v47 }
  0x72   : > { %1281 = vmatpush3.msra.mxu1 %v336_v47  ;;  %443 = vmatprep.mubr.f32.mxu0 %v1672_v0 }
  0x73   : > { %1282 = vmatprep.subr.mxu1 %v333_v48  ;;  %587 = vmatprep.mubr.f32.mxu1 %v1672_v0 }
  0x74   : > { %1283 = vmatpush3.msra.mxu1 %v333_v48  ;;  %444 = vmatmul.mubr.f32.gmra.mxu0 %v279_v49 }
  0x75   : > { %588 = vmatmul.mubr.f32.gmra.mxu1 %v1876_v50  ;;  %1284 = vmatprep.subr.mxu1 %v330_v51 }
  0x76   : > { %1285 = vmatpush3.msra.mxu1 %v330_v51  ;;  %449 = vmatprep.mubr.f32.mxu0 %v1672_v0 }
  0x77   : > { %1286 = vmatprep.subr.mxu1 %v327_v52  ;;  %593 = vmatprep.mubr.f32.mxu1 %v1672_v0 }
  0x78   : > { %1287 = vmatpush3.msra.mxu1 %v327_v52  ;;  %450 = vmatmul.mubr.f32.gmra.mxu0 %v280_v53 }
  0x79   : > { %594 = vmatmul.mubr.f32.gmra.mxu1 %v1883_v54  ;;  %1288 = vmatprep.subr.mxu1 %v324_v55 }
  0x7a   : > { %1289 = vmatpush3.msra.mxu1 %v324_v55  ;;  %455 = vmatprep.mubr.f32.mxu0 %v1672_v0 }
  0x7b   : > { %1290 = vmatprep.subr.mxu1 %v321_v56  ;;  %599 = vmatprep.mubr.f32.mxu1 %v1672_v0 }
  0x7c   : > { %1291 = vmatpush3.msra.mxu1 %v321_v56  ;;  %456 = vmatmul.mubr.f32.gmra.mxu0 %v281_v57 }
  0x7d   : > { %600 = vmatmul.mubr.f32.gmra.mxu1 %v1890_v58  ;;  %1292 = vmatprep.subr.mxu1 %v318_v59 }
  0x7e   : > { %1293 = vmatpush3.msra.mxu1 %v318_v59  ;;  %461 = vmatprep.mubr.f32.mxu0 %v1672_v0 }
  0x7f   : > { %1294 = vmatprep.subr.mxu1 %v315_v60  ;;  %605 = vmatprep.mubr.f32.mxu1 %v1672_v0 }
  0x80   : > { %1295 = vmatpush3.msra.mxu1 %v315_v60  ;;  %462 = vmatmul.mubr.f32.gmra.mxu0 %v282_v61 }
  0x81   : > { %606 = vmatmul.mubr.f32.gmra.mxu1 %v1897_v62  ;;  %1296 = vmatprep.subr.mxu1 %v312_v63 }
  0x82   : > { %1297 = vmatpush3.msra.mxu1 %v312_v63  ;;  %467 = vmatprep.mubr.f32.mxu0 %v1672_v0 }
  0x83   : > { %1298 = vmatprep.subr.mxu1 %v309_v1  ;;  %1300 = vmatprep.mubr.f32.mxu1 %v1836_v33 }
  0x84   : > { %1299 = vmatpush3.msra.mxu1 %v309_v1  ;;  %468 = vmatmul.mubr.f32.gmra.mxu0 %v283_v2 }
  0x85   : > { %1301 = vmatmul.mubr.f32.vlgmr.msra.gmra.mxu1 %v1845_v37  ;;  %473 = vmatprep.mubr.f32.mxu0 %v1672_v0 }
  0x86   : > { %1303 = vmatprep.mubr.f32.mxu1 %v1854_v41 }
  0x88   : > { %474 = vmatmul.mubr.f32.gmra.mxu0 %v284_v3 }
  0x89   : > { %1304 = vmatmul.mubr.f32.gmra.mxu1 %v1864_v45  ;;  %479 = vmatprep.mubr.f32.mxu0 %v1672_v0 }
  0x8a   : > { %1306 = vmatprep.mubr.f32.mxu1 %v279_v49 }
  0x8c   : > { %480 = vmatmul.mubr.f32.gmra.mxu0 %v285_v4 }
  0x8d   : > { %1307 = vmatmul.mubr.f32.gmra.mxu1 %v280_v53  ;;  %485 = vmatprep.mubr.f32.mxu0 %v1672_v0 }
  0x8e   : > { %1309 = vmatprep.mubr.f32.mxu1 %v281_v57 }
  0x90   : > { %486 = vmatmul.mubr.f32.gmra.mxu0 %v286_v5 }
  0x91   : > { %1310 = vmatmul.mubr.f32.gmra.mxu1 %v282_v61  ;;  %491 = vmatprep.mubr.f32.mxu0 %v1672_v0 }
  0x92   : > { %1312 = vmatprep.mubr.f32.mxu1 %v283_v2 }
  0x94   : > { %492 = vmatmul.mubr.f32.gmra.mxu0 %v287_v6 }
  0x95   : > { %1313 = vmatmul.mubr.f32.gmra.mxu1 %v284_v3  ;;  %497 = vmatprep.mubr.f32.mxu0 %v1672_v0 }
  0x96   : > { %1315 = vmatprep.mubr.f32.mxu1 %v285_v4 }
  0x98   : > { %498 = vmatmul.mubr.f32.gmra.mxu0 %v288_v7 }
  0x99   : > { %1316 = vmatmul.mubr.f32.gmra.mxu1 %v286_v5  ;;  %503 = vmatprep.mubr.f32.mxu0 %v1672_v0 }
  0x9a   : > { %1318 = vmatprep.mubr.f32.mxu1 %v287_v6 }
  0x9c   : > { %504 = vmatmul.mubr.f32.gmra.mxu0 %v289_v8 }
  0x9d   : > { %1319 = vmatmul.mubr.f32.gmra.mxu1 %v288_v7  ;;  %509 = vmatprep.mubr.f32.mxu0 %v1672_v0 }
  0x9e   : > { %1321 = vmatprep.mubr.f32.mxu1 %v289_v8 }
  0xa0   : > { %510 = vmatmul.mubr.f32.gmra.mxu0 %v290_v9 }
  0xa1   : > { %1322 = vmatmul.mubr.f32.gmra.mxu1 %v290_v9  ;;  %515 = vmatprep.mubr.f32.mxu0 %v1672_v0 }
  0xa2   : > { %1324 = vmatprep.mubr.f32.mxu1 %v291_v10 }
  0xa4   : > { %516 = vmatmul.mubr.f32.gmra.mxu0 %v291_v10 }
  0xa5   : > { %1325 = vmatmul.mubr.f32.gmra.mxu1 %v292_v11  ;;  %521 = vmatprep.mubr.f32.mxu0 %v1672_v0 }
  0xa6   : > { %1327 = vmatprep.mubr.f32.mxu1 %v293_v12 }
  0xa8   : > { %522 = vmatmul.mubr.f32.gmra.mxu0 %v292_v11 }
  0xa9   : > { %1328 = vmatmul.mubr.f32.gmra.mxu1 %v294_v13  ;;  %527 = vmatprep.mubr.f32.mxu0 %v1672_v0 }
  0xaa   : > { %1330 = vmatprep.mubr.f32.mxu1 %v295_v14 }
  0xac   : > { %528 = vmatmul.mubr.f32.gmra.mxu0 %v293_v12 }
  0xad   : > { %1331 = vmatmul.mubr.f32.gmra.mxu1 %v296_v15  ;;  %533 = vmatprep.mubr.f32.mxu0 %v1672_v0 }
  0xae   : > { %1333 = vmatprep.mubr.f32.mxu1 %v297_v16 }
  0xb0   : > { %534 = vmatmul.mubr.f32.gmra.mxu0 %v294_v13 }
  0xb1   : > { %1334 = vmatmul.mubr.f32.gmra.mxu1 %v298_v17  ;;  %539 = vmatprep.mubr.f32.mxu0 %v1672_v0 }
  0xb2   : > { %1336 = vmatprep.mubr.f32.mxu1 %v1839_v34 }
  0xb4   : > { %540 = vmatmul.mubr.f32.gmra.mxu0 %v295_v14 }
  0xb5   : > { %1337 = vmatmul.mubr.f32.gmra.mxu1 %v1849_v38  ;;  %545 = vmatprep.mubr.f32.mxu0 %v1672_v0 }
  0xb6   : > { %1339 = vmatprep.mubr.f32.mxu1 %v1858_v42 }
  0xb8   : > { %546 = vmatmul.mubr.f32.gmra.mxu0 %v296_v15 }
  0xb9   : > { %1340 = vmatmul.mubr.f32.gmra.mxu1 %v1868_v46  ;;  %551 = vmatprep.mubr.f32.mxu0 %v1672_v0 }
  0xba   : > { %1342 = vmatprep.mubr.f32.mxu1 %v1876_v50 }
  0xbc   : > { %552 = vmatmul.mubr.f32.gmra.mxu0 %v297_v16 }
  0xbd   : > { %1343 = vmatmul.mubr.f32.gmra.mxu1 %v1883_v54  ;;  %557 = vmatprep.mubr.f32.mxu0 %v1672_v0 }
  0xbe   : > { %1345 = vmatprep.mubr.f32.mxu1 %v1890_v58 }
  0xc0   : > { %558 = vmatmul.mubr.f32.gmra.mxu0 %v298_v17 }
  0xc1   : > { %1346 = vmatmul.mubr.f32.gmra.mxu1 %v1897_v62 }
 0x124   : > { %v421_v18 = vpop.f32.mrf.mxu0  ;;  %v565_v19 = vpop.f32.mrf.mxu1 }
 0x125   : > { %v837_v20 = vmul.f32 0.17677669, %v421_v18  ;;  %v861_v21 = vmul.f32 0.17677669, %v565_v19 }
 0x126   : > { %v423_v22 = vpop.f32.mrf.mxu0  ;;  %v567_v23 = vpop.f32.mrf.mxu1 }
 0x127   : > { %869 = vst [vmem:[%s1946_s22] sm:$0xff] %v837_v20  ;;  %893 = vst [vmem:[%s1946_s22 + $0xc0] sm:$0xff] %v861_v21 }
 0x128   : > { %901 = vst [vmem:[%s1951_s23] sm:$0xff] %v423_v22  ;;  %925 = vst [vmem:[%s1951_s23 + $0xc0] sm:$0xff] %v567_v23  ;;  %v427_v0 = vpop.f32.mrf.mxu0 }
 0x129   : > { %v838_v24 = vmul.f32 0.17677669, %v427_v0  ;;  %v571_v25 = vpop.f32.mrf.mxu1 }
 0x12a   : > { %v862_v26 = vmul.f32 0.17677669, %v571_v25  ;;  %v429_v27 = vpop.f32.mrf.mxu0 }
 0x12b   : > { %870 = vst [vmem:[%s1946_s22 + $0x8] sm:$0xff] %v838_v24  ;;  %902 = vst [vmem:[%s1951_s23 + $0x8] sm:$0xff] %v429_v27  ;;  %v573_v28 = vpop.f32.mrf.mxu1 }
 0x12c   : > { %894 = vst [vmem:[%s1946_s22 + $0xc8] sm:$0xff] %v862_v26  ;;  %926 = vst [vmem:[%s1951_s23 + $0xc8] sm:$0xff] %v573_v28  ;;  %v433_v29 = vpop.f32.mrf.mxu0 }
 0x12d   : > { %v839_v30 = vmul.f32 0.17677669, %v433_v29  ;;  %v577_v31 = vpop.f32.mrf.mxu1 }
 0x12e   : > { %v863_v32 = vmul.f32 0.17677669, %v577_v31  ;;  %v435_v33 = vpop.f32.mrf.mxu0 }
 0x12f   : > { %871 = vst [vmem:[%s1946_s22 + $0x10] sm:$0xff] %v839_v30  ;;  %903 = vst [vmem:[%s1951_s23 + $0x10] sm:$0xff] %v435_v33  ;;  %v579_v34 = vpop.f32.mrf.mxu1 }
 0x130   : > { %895 = vst [vmem:[%s1946_s22 + $0xd0] sm:$0xff] %v863_v32  ;;  %927 = vst [vmem:[%s1951_s23 + $0xd0] sm:$0xff] %v579_v34  ;;  %v439_v35 = vpop.f32.mrf.mxu0 }
 0x131   : > { %v840_v36 = vmul.f32 0.17677669, %v439_v35  ;;  %v583_v37 = vpop.f32.mrf.mxu1 }
 0x132   : > { %v864_v38 = vmul.f32 0.17677669, %v583_v37  ;;  %v441_v39 = vpop.f32.mrf.mxu0 }
 0x133   : > { %872 = vst [vmem:[%s1946_s22 + $0x18] sm:$0xff] %v840_v36  ;;  %904 = vst [vmem:[%s1951_s23 + $0x18] sm:$0xff] %v441_v39  ;;  %v585_v40 = vpop.f32.mrf.mxu1 }
 0x134   : > { %896 = vst [vmem:[%s1946_s22 + $0xd8] sm:$0xff] %v864_v38  ;;  %928 = vst [vmem:[%s1951_s23 + $0xd8] sm:$0xff] %v585_v40  ;;  %v445_v41 = vpop.f32.mrf.mxu0 }
 0x135   : > { %v841_v42 = vmul.f32 0.17677669, %v445_v41  ;;  %v589_v43 = vpop.f32.mrf.mxu1 }
 0x136   : > { %v865_v44 = vmul.f32 0.17677669, %v589_v43  ;;  %v447_v45 = vpop.f32.mrf.mxu0 }
 0x137   : > { %873 = vst [vmem:[%s1946_s22 + $0x20] sm:$0xff] %v841_v42  ;;  %905 = vst [vmem:[%s1951_s23 + $0x20] sm:$0xff] %v447_v45  ;;  %v591_v46 = vpop.f32.mrf.mxu1 }
 0x138   : > { %897 = vst [vmem:[%s1946_s22 + $0xe0] sm:$0xff] %v865_v44  ;;  %929 = vst [vmem:[%s1951_s23 + $0xe0] sm:$0xff] %v591_v46  ;;  %v451_v47 = vpop.f32.mrf.mxu0 }
 0x139   : > { %v842_v48 = vmul.f32 0.17677669, %v451_v47  ;;  %v595_v49 = vpop.f32.mrf.mxu1 }
 0x13a   : > { %v866_v50 = vmul.f32 0.17677669, %v595_v49  ;;  %v453_v51 = vpop.f32.mrf.mxu0 }
 0x13b   : > { %874 = vst [vmem:[%s1946_s22 + $0x28] sm:$0xff] %v842_v48  ;;  %906 = vst [vmem:[%s1951_s23 + $0x28] sm:$0xff] %v453_v51  ;;  %v597_v52 = vpop.f32.mrf.mxu1 }
 0x13c   : > { %898 = vst [vmem:[%s1946_s22 + $0xe8] sm:$0xff] %v866_v50  ;;  %930 = vst [vmem:[%s1951_s23 + $0xe8] sm:$0xff] %v597_v52  ;;  %v457_v53 = vpop.f32.mrf.mxu0 }
 0x13d   : > { %v843_v54 = vmul.f32 0.17677669, %v457_v53  ;;  %v601_v55 = vpop.f32.mrf.mxu1 }
 0x13e   : > { %v867_v56 = vmul.f32 0.17677669, %v601_v55  ;;  %v459_v57 = vpop.f32.mrf.mxu0 }
 0x13f   : > { %875 = vst [vmem:[%s1946_s22 + $0x30] sm:$0xff] %v843_v54  ;;  %907 = vst [vmem:[%s1951_s23 + $0x30] sm:$0xff] %v459_v57  ;;  %v603_v58 = vpop.f32.mrf.mxu1 }
 0x140   : > { %899 = vst [vmem:[%s1946_s22 + $0xf0] sm:$0xff] %v867_v56  ;;  %931 = vst [vmem:[%s1951_s23 + $0xf0] sm:$0xff] %v603_v58  ;;  %v463_v59 = vpop.f32.mrf.mxu0 }
 0x141   : > { %v844_v60 = vmul.f32 0.17677669, %v463_v59  ;;  %v607_v61 = vpop.f32.mrf.mxu1 }
 0x142   : > { %v868_v62 = vmul.f32 0.17677669, %v607_v61  ;;  %v465_v63 = vpop.f32.mrf.mxu0 }
 0x143   : > { %876 = vst [vmem:[%s1946_s22 + $0x38] sm:$0xff] %v844_v60  ;;  %908 = vst [vmem:[%s1951_s23 + $0x38] sm:$0xff] %v465_v63  ;;  %v609_v1 = vpop.f32.mrf.mxu1 }
 0x144   : > { %900 = vst [vmem:[%s1946_s22 + $0xf8] sm:$0xff] %v868_v62  ;;  %932 = vst [vmem:[%s1951_s23 + $0xf8] sm:$0xff] %v609_v1  ;;  %v469_v2 = vpop.f32.mrf.mxu0 }
 0x145   : > { %v845_v3 = vmul.f32 0.17677669, %v469_v2  ;;  %v1302_v4 = vpop.f32.mrf.mxu1 }
 0x146   : > { %934 = vst [vmem:[%s1984_s25 + $0x8] sm:$0xff] %v1302_v4  ;;  %v471_v5 = vpop.f32.mrf.mxu0 }
 0x147   : > { %877 = vst [vmem:[%s1946_s22 + $0x40] sm:$0xff] %v845_v3  ;;  %909 = vst [vmem:[%s1951_s23 + $0x40] sm:$0xff] %v471_v5  ;;  %v678_v6 = vpop.f32.mrf.mxu1 }
 0x148   : > { %933 = vst [vmem:[%s1984_s25] sm:$0xff] %v678_v6  ;;  %v475_v7 = vpop.f32.mrf.mxu0 }
 0x149   : > { %v846_v8 = vmul.f32 0.17677669, %v475_v7  ;;  %v1305_v9 = vpop.f32.mrf.mxu1 }
 0x14a   : > { %936 = vst [vmem:[%s1984_s25 + $0x18] sm:$0xff] %v1305_v9  ;;  %v477_v10 = vpop.f32.mrf.mxu0 }
 0x14b   : > { %878 = vst [vmem:[%s1946_s22 + $0x48] sm:$0xff] %v846_v8  ;;  %910 = vst [vmem:[%s1951_s23 + $0x48] sm:$0xff] %v477_v10  ;;  %v688_v11 = vpop.f32.mrf.mxu1 }
 0x14c   : > { %935 = vst [vmem:[%s1984_s25 + $0x10] sm:$0xff] %v688_v11  ;;  %v481_v12 = vpop.f32.mrf.mxu0 }
 0x14d   : > { %v847_v13 = vmul.f32 0.17677669, %v481_v12  ;;  %v1308_v14 = vpop.f32.mrf.mxu1 }
 0x14e   : > { %938 = vst [vmem:[%s1984_s25 + $0x28] sm:$0xff] %v1308_v14  ;;  %v483_v15 = vpop.f32.mrf.mxu0 }
 0x14f   : > { %879 = vst [vmem:[%s1946_s22 + $0x50] sm:$0xff] %v847_v13  ;;  %911 = vst [vmem:[%s1951_s23 + $0x50] sm:$0xff] %v483_v15  ;;  %v698_v16 = vpop.f32.mrf.mxu1 }
 0x150   : > { %937 = vst [vmem:[%s1984_s25 + $0x20] sm:$0xff] %v698_v16  ;;  %v487_v17 = vpop.f32.mrf.mxu0 }
 0x151   : > { %v848_v18 = vmul.f32 0.17677669, %v487_v17  ;;  %v1311_v19 = vpop.f32.mrf.mxu1 }
 0x152   : > { %940 = vst [vmem:[%s1984_s25 + $0x38] sm:$0xff] %v1311_v19  ;;  %v489_v20 = vpop.f32.mrf.mxu0 }
 0x153   : > { %880 = vst [vmem:[%s1946_s22 + $0x58] sm:$0xff] %v848_v18  ;;  %912 = vst [vmem:[%s1951_s23 + $0x58] sm:$0xff] %v489_v20  ;;  %v708_v21 = vpop.f32.mrf.mxu1 }
 0x154   : > { %939 = vst [vmem:[%s1984_s25 + $0x30] sm:$0xff] %v708_v21  ;;  %v493_v22 = vpop.f32.mrf.mxu0 }
 0x155   : > { %v849_v23 = vmul.f32 0.17677669, %v493_v22  ;;  %v1314_v0 = vpop.f32.mrf.mxu1 }
 0x156   : > { %942 = vst [vmem:[%s1984_s25 + $0x48] sm:$0xff] %v1314_v0  ;;  %v495_v24 = vpop.f32.mrf.mxu0 }
 0x157   : > { %881 = vst [vmem:[%s1946_s22 + $0x60] sm:$0xff] %v849_v23  ;;  %913 = vst [vmem:[%s1951_s23 + $0x60] sm:$0xff] %v495_v24  ;;  %v718_v25 = vpop.f32.mrf.mxu1 }
 0x158   : > { %941 = vst [vmem:[%s1984_s25 + $0x40] sm:$0xff] %v718_v25  ;;  %v499_v26 = vpop.f32.mrf.mxu0 }
 0x159   : > { %v850_v27 = vmul.f32 0.17677669, %v499_v26  ;;  %v1317_v28 = vpop.f32.mrf.mxu1 }
 0x15a   : > { %944 = vst [vmem:[%s1984_s25 + $0x58] sm:$0xff] %v1317_v28  ;;  %v501_v29 = vpop.f32.mrf.mxu0 }
 0x15b   : > { %882 = vst [vmem:[%s1946_s22 + $0x68] sm:$0xff] %v850_v27  ;;  %914 = vst [vmem:[%s1951_s23 + $0x68] sm:$0xff] %v501_v29  ;;  %v728_v30 = vpop.f32.mrf.mxu1 }
 0x15c   : > { %943 = vst [vmem:[%s1984_s25 + $0x50] sm:$0xff] %v728_v30  ;;  %v505_v31 = vpop.f32.mrf.mxu0 }
 0x15d   : > { %v851_v32 = vmul.f32 0.17677669, %v505_v31  ;;  %v1320_v33 = vpop.f32.mrf.mxu1 }
 0x15e   : > { %946 = vst [vmem:[%s1984_s25 + $0x68] sm:$0xff] %v1320_v33  ;;  %v507_v34 = vpop.f32.mrf.mxu0 }
 0x15f   : > { %883 = vst [vmem:[%s1946_s22 + $0x70] sm:$0xff] %v851_v32  ;;  %915 = vst [vmem:[%s1951_s23 + $0x70] sm:$0xff] %v507_v34  ;;  %v738_v35 = vpop.f32.mrf.mxu1 }
 0x160   : > { %945 = vst [vmem:[%s1984_s25 + $0x60] sm:$0xff] %v738_v35  ;;  %v511_v36 = vpop.f32.mrf.mxu0 }
 0x161   : > { %v852_v37 = vmul.f32 0.17677669, %v511_v36  ;;  %v1323_v38 = vpop.f32.mrf.mxu1 }
 0x162   : > { %948 = vst [vmem:[%s1984_s25 + $0x78] sm:$0xff] %v1323_v38  ;;  %v513_v39 = vpop.f32.mrf.mxu0 }
 0x163   : > { %884 = vst [vmem:[%s1946_s22 + $0x78] sm:$0xff] %v852_v37  ;;  %916 = vst [vmem:[%s1951_s23 + $0x78] sm:$0xff] %v513_v39  ;;  %v748_v40 = vpop.f32.mrf.mxu1 }
 0x164   : > { %947 = vst [vmem:[%s1984_s25 + $0x70] sm:$0xff] %v748_v40  ;;  %v517_v41 = vpop.f32.mrf.mxu0 }
 0x165   : > { %v853_v42 = vmul.f32 0.17677669, %v517_v41  ;;  %v1326_v43 = vpop.f32.mrf.mxu1 }
 0x166   : > { %950 = vst [vmem:[%s1984_s25 + $0x88] sm:$0xff] %v1326_v43  ;;  %v519_v44 = vpop.f32.mrf.mxu0 }
 0x167   : > { %885 = vst [vmem:[%s1946_s22 + $0x80] sm:$0xff] %v853_v42  ;;  %917 = vst [vmem:[%s1951_s23 + $0x80] sm:$0xff] %v519_v44  ;;  %v758_v45 = vpop.f32.mrf.mxu1 }
 0x168   : > { %949 = vst [vmem:[%s1984_s25 + $0x80] sm:$0xff] %v758_v45  ;;  %v523_v46 = vpop.f32.mrf.mxu0 }
 0x169   : > { %v854_v47 = vmul.f32 0.17677669, %v523_v46  ;;  %v1329_v48 = vpop.f32.mrf.mxu1 }
 0x16a   : > { %952 = vst [vmem:[%s1984_s25 + $0x98] sm:$0xff] %v1329_v48  ;;  %v525_v49 = vpop.f32.mrf.mxu0 }
 0x16b   : > { %886 = vst [vmem:[%s1946_s22 + $0x88] sm:$0xff] %v854_v47  ;;  %918 = vst [vmem:[%s1951_s23 + $0x88] sm:$0xff] %v525_v49  ;;  %v768_v50 = vpop.f32.mrf.mxu1 }
 0x16c   : > { %951 = vst [vmem:[%s1984_s25 + $0x90] sm:$0xff] %v768_v50  ;;  %v529_v51 = vpop.f32.mrf.mxu0 }
 0x16d   : > { %v855_v52 = vmul.f32 0.17677669, %v529_v51  ;;  %v1332_v53 = vpop.f32.mrf.mxu1 }
 0x16e   : > { %954 = vst [vmem:[%s1984_s25 + $0xa8] sm:$0xff] %v1332_v53  ;;  %v531_v54 = vpop.f32.mrf.mxu0 }
 0x16f   : > { %887 = vst [vmem:[%s1946_s22 + $0x90] sm:$0xff] %v855_v52  ;;  %919 = vst [vmem:[%s1951_s23 + $0x90] sm:$0xff] %v531_v54  ;;  %v778_v55 = vpop.f32.mrf.mxu1 }
 0x170   : > { %953 = vst [vmem:[%s1984_s25 + $0xa0] sm:$0xff] %v778_v55  ;;  %v535_v56 = vpop.f32.mrf.mxu0 }
 0x171   : > { %v856_v57 = vmul.f32 0.17677669, %v535_v56  ;;  %v1335_v58 = vpop.f32.mrf.mxu1 }
 0x172   : > { %956 = vst [vmem:[%s1984_s25 + $0xb8] sm:$0xff] %v1335_v58  ;;  %v537_v59 = vpop.f32.mrf.mxu0 }
 0x173   : > { %888 = vst [vmem:[%s1946_s22 + $0x98] sm:$0xff] %v856_v57  ;;  %920 = vst [vmem:[%s1951_s23 + $0x98] sm:$0xff] %v537_v59  ;;  %v788_v60 = vpop.f32.mrf.mxu1 }
 0x174   : > { %955 = vst [vmem:[%s1984_s25 + $0xb0] sm:$0xff] %v788_v60  ;;  %v541_v61 = vpop.f32.mrf.mxu0 }
 0x175   : > { %v857_v62 = vmul.f32 0.17677669, %v541_v61  ;;  %v1338_v63 = vpop.f32.mrf.mxu1 }
 0x176   : > { %958 = vst [vmem:[%s1984_s25 + $0xc8] sm:$0xff] %v1338_v63  ;;  %v543_v1 = vpop.f32.mrf.mxu0 }
 0x177   : > { %889 = vst [vmem:[%s1946_s22 + $0xa0] sm:$0xff] %v857_v62  ;;  %921 = vst [vmem:[%s1951_s23 + $0xa0] sm:$0xff] %v543_v1  ;;  %v798_v2 = vpop.f32.mrf.mxu1 }
 0x178   : > { %957 = vst [vmem:[%s1984_s25 + $0xc0] sm:$0xff] %v798_v2  ;;  %v547_v3 = vpop.f32.mrf.mxu0 }
 0x179   : > { %v858_v4 = vmul.f32 0.17677669, %v547_v3  ;;  %v1341_v5 = vpop.f32.mrf.mxu1 }
 0x17a   : > { %960 = vst [vmem:[%s1984_s25 + $0xd8] sm:$0xff] %v1341_v5  ;;  %v549_v6 = vpop.f32.mrf.mxu0 }
 0x17b   : > { %890 = vst [vmem:[%s1946_s22 + $0xa8] sm:$0xff] %v858_v4  ;;  %922 = vst [vmem:[%s1951_s23 + $0xa8] sm:$0xff] %v549_v6  ;;  %v808_v7 = vpop.f32.mrf.mxu1 }
 0x17c   : > { %959 = vst [vmem:[%s1984_s25 + $0xd0] sm:$0xff] %v808_v7  ;;  %v553_v8 = vpop.f32.mrf.mxu0 }
 0x17d   : > { %v859_v9 = vmul.f32 0.17677669, %v553_v8  ;;  %v1344_v10 = vpop.f32.mrf.mxu1 }
 0x17e   : > { %962 = vst [vmem:[%s1984_s25 + $0xe8] sm:$0xff] %v1344_v10  ;;  %v555_v11 = vpop.f32.mrf.mxu0 }
 0x17f   : > { %891 = vst [vmem:[%s1946_s22 + $0xb0] sm:$0xff] %v859_v9  ;;  %923 = vst [vmem:[%s1951_s23 + $0xb0] sm:$0xff] %v555_v11  ;;  %v818_v12 = vpop.f32.mrf.mxu1 }
 0x180   : > { %961 = vst [vmem:[%s1984_s25 + $0xe0] sm:$0xff] %v818_v12  ;;  %v559_v13 = vpop.f32.mrf.mxu0 }
 0x181   : > { %v860_v14 = vmul.f32 0.17677669, %v559_v13  ;;  %v1347_v15 = vpop.f32.mrf.mxu1 }
 0x182   : > { %964 = vst [vmem:[%s1984_s25 + $0xf8] sm:$0xff] %v1347_v15  ;;  %v561_v16 = vpop.f32.mrf.mxu0 }
 0x183   : > { %892 = vst [vmem:[%s1946_s22 + $0xb8] sm:$0xff] %v860_v14  ;;  %924 = vst [vmem:[%s1951_s23 + $0xb8] sm:$0xff] %v561_v16  ;;  %v828_v17 = vpop.f32.mrf.mxu1  ;;  %s1528_s22 = sshll.u32 %s1673_s14, 4  ;;  %s1529_s22 = int_to_ptr.vmem [resolvable:$false] %s1528_s22 }
 0x184   : > { %963 = vst [vmem:[%s1984_s25 + $0xf0] sm:$0xff] %v828_v17  ;;  %s1530_s23 = scalar_lea.vmem %s1529_s22, 8192  ;;  %p1531_p3 = scmp.lt.s32.totalorder %s2056_s7, %s1529_s22 }
 0x185   : > { %p1532_p5 = scmp.lt.s32.totalorder %s1530_s23, %s1524_s18 }
 0x187   : > { %p1533_p7 = por %p1532_p5, %p1531_p3 }
 0x189   : > { %p1534_p2 = pnand %p1533_p7, %p1527_p12 }
 0x18b   : > { %1537 = shalt.err (!%p1534_p2)
}
 0x18c   : > { %s1538_s21 = scalar_lea.hbm %s2053_s27, 4096  ;;  %s1542_s6 = scalar_lea.hbm %s2180_s3, 8192 }
 0x18d   : > { %p1539_p6 = scmp.ne.s32.totalorder %s2053_s27, %s1538_s21  ;;  %p1543_p11 = scmp.lt.s32.totalorder %s2053_s27, %s2180_s3 }
 0x18e   : > { %p1544_p1 = scmp.lt.s32.totalorder %s1542_s6, %s1538_s21 }
 0x18f   : > { %p1540_p9 = pnand %p1539_p6, %p1788_p0 }
 0x190   : > { %p1545_p8 = por %p1544_p1, %p1543_p11 }
 0x191   : > { %p1541_p13 = pneg %p1540_p9 }
 0x193   : > { %p1546_p4 = pnand %p1545_p8, %p1541_p13 }
 0x195   : > { %1549 = shalt.err (!%p1546_p4)
}
 0x196   : > { %s1674_s18 = smov 128   ;;  %s1675_s14 = smov 8  }
 0x197   : > { %1387 = dma.vmem_to_hbm [thread:$0]  (%p1788_p0), %s2056_s7, 4096, %s2053_s27, %s2078_s9, %s1674_s18, %s1674_s18, %s1675_s14  }
 0x198   : > { %s966_s22 = scalar_lea.sflag [#allocation4], %s1816_s13  ;;  %s1550_s23 = scalar_lea.vmem %s2064_s8, 4096 }
 0x199   : > { %p1551_p10 = scmp.ne.s32.totalorder %s2064_s8, %s1550_s23  ;;  %s1676_s21 = smov [#allocation7]  }
 0x19a   : > { %s1554_s25 = sshll.u32 %s1676_s21, 4  ;;  %s1555_s25 = int_to_ptr.vmem [resolvable:$false] %s1554_s25 }
 0x19b   : > { %p1552_p12 = pnand %p1551_p10, %p1788_p0  ;;  %s1556_s5 = scalar_lea.vmem %s1555_s25, 8192 }
 0x19c   : > { %p1557_p5 = scmp.lt.s32.totalorder %s2064_s8, %s1555_s25  ;;  %p1558_p7 = scmp.lt.s32.totalorder %s1556_s5, %s1550_s23 }
 0x19d   : > { %p1553_p3 = pneg %p1552_p12 }
 0x19e   : > { %p1559_p2 = por %p1558_p7, %p1557_p5 }
 0x1a0   : > { %p1560_p6 = pnand %p1559_p2, %p1553_p3 }
 0x1a2   : > { %1563 = shalt.err (!%p1560_p6)
}
 0x1a3   : > { %s1564_s7 = scalar_lea.hbm %s2062_s28, 4096  ;;  %s1568_s6 = scalar_lea.hbm %s2179_s2, 8192 }
 0x1a4   : > { %p1565_p9 = scmp.ne.s32.totalorder %s2062_s28, %s1564_s7  ;;  %p1569_p1 = scmp.lt.s32.totalorder %s2062_s28, %s2179_s2 }
 0x1a5   : > { %p1570_p8 = scmp.lt.s32.totalorder %s1568_s6, %s1564_s7 }
 0x1a6   : > { %p1566_p13 = pnand %p1565_p9, %p1788_p0 }
 0x1a7   : > { %p1571_p4 = por %p1570_p8, %p1569_p1 }
 0x1a8   : > { %p1567_p11 = pneg %p1566_p13 }
 0x1aa   : > { %p1572_p10 = pnand %p1571_p4, %p1567_p11 }
 0x1ac   : > { %1575 = shalt.err (!%p1572_p10)
}
 0x1ad   : > { %1386 = dma.vmem_to_hbm [thread:$0]  (%p1788_p0), %s2064_s8, 4096, %s2062_s28, %s966_s22, %s1674_s18, %s1674_s18, %s1675_s14  }
 0x1ae   : > { %s1576_s23 = scalar_lea.vmem %s2073_s10, 4096  ;;  %s1677_s21 = smov [#allocation10]  }
 0x1af   : > { %p1577_p12 = scmp.ne.s32.totalorder %s2073_s10, %s1576_s23  ;;  %s1580_s25 = sshll.u32 %s1677_s21, 4  ;;  %s1581_s25 = int_to_ptr.vmem [resolvable:$false] %s1580_s25 }
 0x1b0   : > { %s1582_s5 = scalar_lea.vmem %s1581_s25, 8192  ;;  %p1583_p7 = scmp.lt.s32.totalorder %s2073_s10, %s1581_s25 }
 0x1b1   : > { %p1578_p3 = pnand %p1577_p12, %p1788_p0  ;;  %p1584_p2 = scmp.lt.s32.totalorder %s1582_s5, %s1576_s23 }
 0x1b3   : > { %p1579_p5 = pneg %p1578_p3  ;;  %p1585_p6 = por %p1584_p2, %p1583_p7 }
 0x1b5   : > { %p1586_p9 = pnand %p1585_p6, %p1579_p5 }
 0x1b7   : > { %1589 = shalt.err (!%p1586_p9)
}
 0x1b8   : > { %s1590_s7 = scalar_lea.hbm %s2071_s12, 4096  ;;  %s1594_s22 = scalar_lea.hbm %s2181_s4, 8192 }
 0x1b9   : > { %p1591_p13 = scmp.ne.s32.totalorder %s2071_s12, %s1590_s7  ;;  %p1595_p8 = scmp.lt.s32.totalorder %s2071_s12, %s2181_s4 }
 0x1ba   : > { %p1596_p4 = scmp.lt.s32.totalorder %s1594_s22, %s1590_s7 }
 0x1bb   : > { %p1592_p11 = pnand %p1591_p13, %p1788_p0 }
 0x1bc   : > { %p1597_p10 = por %p1596_p4, %p1595_p8 }
 0x1bd   : > { %p1593_p1 = pneg %p1592_p11 }
 0x1bf   : > { %p1598_p12 = pnand %p1597_p10, %p1593_p1 }
 0x1c1   : > { %1601 = shalt.err (!%p1598_p12)
}
 0x1c2   : > { %1388 = dma.vmem_to_hbm [thread:$0]  (%p1788_p0), %s2073_s10, 4096, %s2071_s12, %s2078_s9, %s1674_s18, %s1674_s18, %s1675_s14  }
 0x1c3 PF: > { %s1042_s6 = sand.u32 1, %s1644_s15   ;;  %p2196_p3 = scmp.ne.s32.totalorder %s2186_s24, 0 }
 0x1c4   : > { %p2197_p5 = scmp.ge.s32.totalorder %s1664_s20, 2  ;;  %s1043_s1 = scalar_lea.sflag [#allocation4], %s1042_s6 }
 0x1c6   : > { %p1401_p7 = pnand %p2197_p5, %p2196_p3 }
 0x1c8   : > { %p1402_p2 = pneg %p1401_p7 }
 0x1ca   : > { %1635 = dma.done.wait (%p1402_p2), %s1043_s1, 4096  }
 0x1cb   : > { %1637 = vsyncadd (%p1402_p2), %s1043_s1, 4294963200  ;;  %s2198_s11 = sadd.s32 4294967294, %s1664_s20  }
 0x1cc   : > { %s1051_s30 = sand.u32 1, %s2198_s11  }
 0x1cd   : > { %s1052_s23 = scalar_lea.sflag [#allocation9], %s1051_s30 }
 0x1ce   : > { %1639 = dma.done.wait (%p1402_p2), %s1052_s23, 8192  }
 0x1cf   : > { %1641 = vsyncadd (%p1402_p2), %s1052_s23, 4294959104  ;;  %s25_s20 = sadd.s32 1, %s1664_s20   ;;  %s2199_s15 = smov %s1648_s16 }
 0x1d0   : > { %p22_p0 = scmp.ge.s32.totalorder %s25_s20, 4   ;;  %s2200_s16 = smov %s1652_s17 }
 0x1d1   : > { %s2201_s17 = smov %s1797_s26  ;;  %s2202_s18 = smov %s1660_s19 }
 0x1d2   : > { %s2203_s19 = smov %s2205_s29  ;;  %24 = sbr.rel (!%p22_p0) target bundleno = 11 (0xb), region = 109 }
 0x1d7   :  { %1066 = vsyncpa [#allocation3], 1 }
 0x1d8   :  { %1068 = vsyncpa [#allocation3 + $0x1], 1 }
 0x1d9   :  { %1069 = vsyncpa [#allocation6], 1 }
 0x1da   :  { %1070 = vsyncpa [#allocation4], 1 }
 0x1db   :  { %1072 = vsyncpa [#allocation4 + $0x1], 1 }
 0x1dc   :  { %1073 = vsyncpa [#allocation9], 1 }
 0x1dd   :  { %1075 = vsyncpa [#allocation9 + $0x1], 1 }

</bundles_post_ra>
